<compile_context>
chip_gen: v7x
topology: tpu7x:2x2x1
jax: 0.10.0
libtpu: 0.0.40
codegen_flags: <defaults>
</compile_context>

<pallas_src>
import functools

import jax
import jax.numpy as jnp
from jax.experimental import pallas as pl
from jax.experimental.pallas import tpu as pltpu


def _round_up(x, m):
    return ((x + m - 1) // m) * m


def _vmem_budget_and_limit():
    """(tile budget, vmem_limit_bytes) per TPU generation (trace-time query, safe fallback)."""
    cap = 64 * 1024 * 1024
    try:
        cap = int(pltpu.get_tpu_info().vmem_capacity_bytes)
    except Exception:
        pass
    if cap >= 128 * 1024 * 1024:                  # v5e / v6e: 128 MiB VMEM per core
        return 48 * 1024 * 1024, 64 * 1024 * 1024
    return 24 * 1024 * 1024, 32 * 1024 * 1024     # v7x (64 MiB per TC) or unknown


def _choose_block_k(d, hidden_p, ncls_p, bm, budget):
    """Largest 128-multiple K tile fitting the VMEM budget, kept to >= ~3 steps at large D."""
    d_aligned = _round_up(d, 128)
    # Residents that do not scale with bk (double-buffered where Pallas pipelines them).
    fixed = (bm * hidden_p * 4                     # f32 accumulator scratch
             + 2 * hidden_p * ncls_p * 2           # W2 tile (bf16, double-buffered)
             + 2 * bm * ncls_p * 4                 # output block (f32, double-buffered)
             + 2 * hidden_p * 4                    # b1 (f32, double-buffered)
             + 2 * ncls_p * 4)                     # b2 (f32, double-buffered)
    per_k = 2 * 2 * (bm + hidden_p)                # double-buffered bf16 x-tile + W1-tile per K col
    bk = max(128, ((budget - fixed) // per_k) // 128 * 128)
    bk = min(bk, d_aligned)
    # Keep >= ~3 K steps at realistic D so x/W1 DMAs overlap the MXU.
    if d_aligned > 1024:
        bk = min(bk, max(512, _round_up((d_aligned + 2) // 3, 512)))
    return bk


def _mlp_kernel(x_ref, w1_ref, b1_ref, w2_ref, b2_ref, o_ref, acc_ref):
    k = pl.program_id(1)

    @pl.when(k == 0)
    def _():
        # Fold the first-layer bias into the accumulator init.
        acc_ref[...] = jnp.broadcast_to(b1_ref[...], acc_ref.shape).astype(jnp.float32)

    # Partial first-layer matmul over this K-tile (bf16 operands, f32 accumulation).
    acc_ref[...] += jnp.dot(
        x_ref[...], w1_ref[...], preferred_element_type=jnp.float32
    )

    @pl.when(k == pl.num_programs(1) - 1)
    def _():
        h = jnp.maximum(acc_ref[...], 0.0)                      # ReLU (bias already in acc)
        logits = jnp.dot(
            h.astype(w2_ref.dtype), w2_ref[...],
            preferred_element_type=jnp.float32,
        ) + b2_ref[...]
        o_ref[...] = logits.astype(o_ref.dtype)


def prepare_params(w1, b1, w2, b2, *, max_bm=128):
    """One-time pad + bf16 cast of the weights into kernel-ready (lane-dense) layout.

    w1: (d, hidden), b1: (hidden,), w2: (hidden, nclasses), b2: (nclasses,)
    Returns ((w1_p, b1_p, w2_p, b2_p), meta) where meta holds the static tiling info.
    """
    d, hidden = w1.shape
    nclasses = w2.shape[1]
    hidden_p = _round_up(hidden, 128)
    ncls_p = _round_up(nclasses, 128)

    budget, _ = _vmem_budget_and_limit()
    bk = _choose_block_k(d, hidden_p, ncls_p, max_bm, budget)
    d_pad = _round_up(d, bk)

    # Zero padding is exact: padded x cols / W1 rows contribute nothing; padded hidden
    # units get acc=0 -> ReLU 0 -> multiplied by zero W2 rows; padded classes sliced off.
    w1_p = jnp.zeros((d_pad, hidden_p), jnp.bfloat16).at[:d, :hidden].set(
        w1.astype(jnp.bfloat16))
    b1_p = jnp.zeros((1, hidden_p), jnp.float32).at[0, :hidden].set(
        b1.astype(jnp.float32))
    w2_p = jnp.zeros((hidden_p, ncls_p), jnp.bfloat16).at[:hidden, :nclasses].set(
        w2.astype(jnp.bfloat16))
    b2_p = jnp.zeros((1, ncls_p), jnp.float32).at[0, :nclasses].set(
        b2.astype(jnp.float32))

    meta = dict(bk=bk, nclasses=nclasses)
    return (w1_p, b1_p, w2_p, b2_p), meta


@functools.partial(jax.jit, static_argnames=("bk", "nclasses"))
def network_forward(x, w1_p, b1_p, w2_p, b2_p, *, bk, nclasses):
    """x: (B, C, 32, 32) float32; pre-prepared weights; returns (B, nclasses) float32."""
    batch = x.shape[0]
    x2d = x.reshape(batch, -1)                    # == torch x.view(B, -1)
    d = x2d.shape[1]
    d_pad, hidden_p = w1_p.shape
    ncls_p = w2_p.shape[1]

    # M tiling: bf16 packs 2 rows/sublane -> round to 16; cap at 128 so both v7x
    # TensorCores get an M tile once batch is >= 2 tiles (and padding waste stays low).
    bm = min(128, _round_up(batch, 16))
    padded_b = _round_up(batch, bm)

    # x is cast/padded per call (it changes every call); only a (B, D) bf16 copy.
    x_p = jnp.zeros((padded_b, d_pad), jnp.bfloat16).at[:batch, :d].set(
        x2d.astype(jnp.bfloat16))

    _, vmem_limit = _vmem_budget_and_limit()

    grid = (padded_b // bm, d_pad // bk)
    out = pl.pallas_call(
        _mlp_kernel,
        out_shape=jax.ShapeDtypeStruct((padded_b, ncls_p), jnp.float32),
        grid_spec=pltpu.PrefetchScalarGridSpec(
            num_scalar_prefetch=0,
            grid=grid,
            in_specs=[
                pl.BlockSpec((bm, bk), lambda i, k: (i, k)),             # x tile
                pl.BlockSpec((bk, hidden_p), lambda i, k: (k, 0)),       # W1 tile
                pl.BlockSpec((1, hidden_p), lambda i, k: (0, 0)),        # b1 (full)
                pl.BlockSpec((hidden_p, ncls_p), lambda i, k: (0, 0)),   # W2 (full)
                pl.BlockSpec((1, ncls_p), lambda i, k: (0, 0)),          # b2 (full)
            ],
            out_specs=pl.BlockSpec((bm, ncls_p), lambda i, k: (i, 0)),   # lane-dense out
            scratch_shapes=[pltpu.VMEM((bm, hidden_p), jnp.float32)],
        ),
        compiler_params=pltpu.CompilerParams(
            dimension_semantics=("parallel", "arbitrary"),  # M parallel (v7x 2 TCs), K reduction
            vmem_limit_bytes=vmem_limit,
        ),
    )(x_p, w1_p, b1_p, w2_p, b2_p)
    return out[:batch, :nclasses]


def init_params(key, nchannels, hiddenunits, nclasses):
    """Deterministic PyTorch-style (uniform +/- 1/sqrt(fan_in)) init."""
    d = nchannels * 32 * 32
    k1, k2, k3, k4 = jax.random.split(key, 4)
    bound1 = 1.0 / jnp.sqrt(d)
    bound2 = 1.0 / jnp.sqrt(hiddenunits)
    # stored pre-transposed: (in, out)
    w1 = jax.random.uniform(k1, (d, hiddenunits), jnp.float32, -bound1, bound1)
    b1 = jax.random.uniform(k2, (hiddenunits,), jnp.float32, -bound1, bound1)
    w2 = jax.random.uniform(k3, (hiddenunits, nclasses), jnp.float32, -bound2, bound2)
    b2 = jax.random.uniform(k4, (nclasses,), jnp.float32, -bound2, bound2)
    return w1, b1, w2, b2


if __name__ == "__main__":
    key = jax.random.PRNGKey(0)
    batch, nchannels, hiddenunits, nclasses = 2, 3, 32, 10

    kx, kp = jax.random.split(key)
    x = jax.random.normal(kx, (batch, nchannels, 32, 32), jnp.float32)
    w1, b1, w2, b2 = init_params(kp, nchannels, hiddenunits, nclasses)

    # One-time weight prep (pad + bf16 cast); reused across calls.
    params, meta = prepare_params(w1, b1, w2, b2)

    out = network_forward(x, *params, **meta)
    out = jax.block_until_ready(out)

    # Pure-JAX f32 reference of the same math (kernel uses bf16 operands -> loose tol).
    x2d = x.reshape(batch, -1)
    ref = jnp.maximum(x2d @ w1 + b1, 0.0) @ w2 + b2
    assert out.shape == (batch, nclasses)
    assert jnp.allclose(out, ref, atol=5e-2, rtol=5e-2), "mismatch vs reference"

    print("KERNEL_OK")
</pallas_src>

<mosaic_0001>
module attributes {stable_mosaic.version = 11 : i64} {
  func.func @_mlp_kernel(%arg0: i32, %arg1: i32, %arg2: memref<16x1024xbf16, #tpu.memory_space<vmem>>, %arg3: memref<1024x128xbf16, #tpu.memory_space<vmem>>, %arg4: memref<1x128xf32, #tpu.memory_space<vmem>>, %arg5: memref<128x128xbf16, #tpu.memory_space<vmem>>, %arg6: memref<1x128xf32, #tpu.memory_space<vmem>>, %arg7: memref<16x128xf32, #tpu.memory_space<vmem>>, %arg8: memref<16x128xf32, #tpu.memory_space<vmem>>) attributes {dimension_semantics = [#tpu.dimension_semantics<parallel>, #tpu.dimension_semantics<arbitrary>], iteration_bounds = array<i64: 1, 3>, scalar_prefetch = 0 : i64, scratch_operands = 1 : i64, tpu.core_type = #tpu.core_type<tc>, window_params = [{transform_indices = @transform_0, window_bounds = array<i64: 16, 1024>}, {transform_indices = @transform_1, window_bounds = array<i64: 1024, 128>}, {pipeline_mode = #tpu.pipeline_mode<synchronous>, transform_indices = @transform_2, window_bounds = array<i64: 1, 128>}, {pipeline_mode = #tpu.pipeline_mode<synchronous>, transform_indices = @transform_3, window_bounds = array<i64: 128, 128>}, {pipeline_mode = #tpu.pipeline_mode<synchronous>, transform_indices = @transform_4, window_bounds = array<i64: 1, 128>}, {transform_indices = @transform_5, window_bounds = array<i64: 16, 128>}]} {
    %c0_i32 = arith.constant 0 : i32
    %0 = arith.cmpi eq, %arg1, %c0_i32 : i32
    %1 = arith.extui %0 : i1 to i32
    %c0_i32_0 = arith.constant 0 : i32
    %2 = arith.cmpi ne, %1, %c0_i32_0 : i32
    scf.if %2 {
      %c0_9 = arith.constant 0 : index
      %c0_10 = arith.constant 0 : index
      %12 = vector.load %arg4[%c0_9, %c0_10] : memref<1x128xf32, #tpu.memory_space<vmem>>, vector<1x128xf32>
      %13 = vector.shape_cast %12 : vector<1x128xf32> to vector<1x128xf32>
      %14 = vector.broadcast %13 : vector<1x128xf32> to vector<16x128xf32>
      %c0_11 = arith.constant 0 : index
      %c0_12 = arith.constant 0 : index
      %15 = vector.load %arg8[%c0_11, %c0_12] : memref<16x128xf32, #tpu.memory_space<vmem>>, vector<16x128xf32>
      tpu.vector_store %arg8[%c0_11, %c0_12], %14 {strides = array<i32>} : memref<16x128xf32, #tpu.memory_space<vmem>>, vector<16x128xf32>,
    } else {
    }
    %c0 = arith.constant 0 : index
    %c0_1 = arith.constant 0 : index
    %3 = vector.load %arg8[%c0, %c0_1] : memref<16x128xf32, #tpu.memory_space<vmem>>, vector<16x128xf32>
    %c0_2 = arith.constant 0 : index
    %c0_3 = arith.constant 0 : index
    %4 = vector.load %arg2[%c0_2, %c0_3] : memref<16x1024xbf16, #tpu.memory_space<vmem>>, vector<16x1024xbf16>
    %c0_4 = arith.constant 0 : index
    %c0_5 = arith.constant 0 : index
    %5 = vector.load %arg3[%c0_4, %c0_5] : memref<1024x128xbf16, #tpu.memory_space<vmem>>, vector<1024x128xbf16>
    %cst = arith.constant dense<0.000000e+00> : vector<16x128xf32>
    %6 = tpu.matmul %4, %5, %cst {dimension_numbers = #tpu.dot_dimension_numbers<[1], [0], [0], [1], [0, 0, 1, 1], [], []>} : vector<16x1024xbf16>, vector<1024x128xbf16>, vector<16x128xf32> -> vector<16x128xf32>
    %7 = arith.addf %3, %6 : vector<16x128xf32>
    %c0_6 = arith.constant 0 : index
    %c0_7 = arith.constant 0 : index
    %8 = vector.load %arg8[%c0_6, %c0_7] : memref<16x128xf32, #tpu.memory_space<vmem>>, vector<16x128xf32>
    tpu.vector_store %arg8[%c0_6, %c0_7], %7 {strides = array<i32>} : memref<16x128xf32, #tpu.memory_space<vmem>>, vector<16x128xf32>,
    %c2_i32 = arith.constant 2 : i32
    %9 = arith.cmpi eq, %arg1, %c2_i32 : i32
    %10 = arith.extui %9 : i1 to i32
    %c0_i32_8 = arith.constant 0 : i32
    %11 = arith.cmpi ne, %10, %c0_i32_8 : i32
    scf.if %11 {
      %c0_9 = arith.constant 0 : index
      %c0_10 = arith.constant 0 : index
      %12 = vector.load %arg8[%c0_9, %c0_10] : memref<16x128xf32, #tpu.memory_space<vmem>>, vector<16x128xf32>
      %cst_11 = arith.constant 0.000000e+00 : f32
      %13 = vector.broadcast %cst_11 : f32 to vector<16x128xf32>
      %14 = arith.maximumf %12, %13 : vector<16x128xf32>
      %15 = arith.truncf %14 : vector<16x128xf32> to vector<16x128xbf16>
      %c0_12 = arith.constant 0 : index
      %c0_13 = arith.constant 0 : index
      %16 = vector.load %arg5[%c0_12, %c0_13] : memref<128x128xbf16, #tpu.memory_space<vmem>>, vector<128x128xbf16>
      %cst_14 = arith.constant dense<0.000000e+00> : vector<16x128xf32>
      %17 = tpu.matmul %15, %16, %cst_14 {dimension_numbers = #tpu.dot_dimension_numbers<[1], [0], [0], [1], [0, 0, 1, 1], [], []>} : vector<16x128xbf16>, vector<128x128xbf16>, vector<16x128xf32> -> vector<16x128xf32>
      %c0_15 = arith.constant 0 : index
      %c0_16 = arith.constant 0 : index
      %18 = vector.load %arg6[%c0_15, %c0_16] : memref<1x128xf32, #tpu.memory_space<vmem>>, vector<1x128xf32>
      %19 = vector.broadcast %18 : vector<1x128xf32> to vector<16x128xf32>
      %20 = arith.addf %17, %19 : vector<16x128xf32>
      %c0_17 = arith.constant 0 : index
      %c0_18 = arith.constant 0 : index
      %21 = vector.load %arg7[%c0_17, %c0_18] : memref<16x128xf32, #tpu.memory_space<vmem>>, vector<16x128xf32>
      tpu.vector_store %arg7[%c0_17, %c0_18], %20 {strides = array<i32>} : memref<16x128xf32, #tpu.memory_space<vmem>>, vector<16x128xf32>,
    } else {
    }
    return
  }
  func.func @transform_0(%arg0: i32, %arg1: i32) -> (i32, i32) {
    %c0_i32 = arith.constant 0 : i32
    return %arg0, %arg1 : i32, i32
  }
  func.func @transform_1(%arg0: i32, %arg1: i32) -> (i32, i32) {
    %c0_i32 = arith.constant 0 : i32
    %c0_i32_0 = arith.constant 0 : i32
    return %arg1, %c0_i32 : i32, i32
  }
  func.func @transform_2(%arg0: i32, %arg1: i32) -> (i32, i32) {
    %c0_i32 = arith.constant 0 : i32
    %c0_i32_0 = arith.constant 0 : i32
    %c0_i32_1 = arith.constant 0 : i32
    return %c0_i32, %c0_i32_0 : i32, i32
  }
  func.func @transform_3(%arg0: i32, %arg1: i32) -> (i32, i32) {
    %c0_i32 = arith.constant 0 : i32
    %c0_i32_0 = arith.constant 0 : i32
    %c0_i32_1 = arith.constant 0 : i32
    return %c0_i32, %c0_i32_0 : i32, i32
  }
  func.func @transform_4(%arg0: i32, %arg1: i32) -> (i32, i32) {
    %c0_i32 = arith.constant 0 : i32
    %c0_i32_0 = arith.constant 0 : i32
    %c0_i32_1 = arith.constant 0 : i32
    return %c0_i32, %c0_i32_0 : i32, i32
  }
  func.func @transform_5(%arg0: i32, %arg1: i32) -> (i32, i32) {
    %c0_i32 = arith.constant 0 : i32
    %c0_i32_0 = arith.constant 0 : i32
    return %arg0, %c0_i32 : i32, i32
  }
}

</mosaic_0001>

<bundles_post_ra>
// kernel: network_forward.1
= control target key start
LH: loop header
LB: loop body
LE: loop exit
PB: predicated region body
PF: predicated region fallthrough
CT: control target
= control target key end

     0   :  { %10 = vsyncpa [#allocation5], 0  ;;  %s1971_s0 = inlined_call_operand.vmem [shape: bf16[16,3072], index: 0, kind: input, shape index: {}]   ;;  %s1972_s1 = inlined_call_operand.hbm [shape: bf16[3072,128], index: 1, kind: input, shape index: {}]   ;;  %s1973_s2 = inlined_call_operand.vmem [shape: f32[1,128], index: 2, kind: input, shape index: {}]   ;;  %s1974_s3 = inlined_call_operand.vmem [shape: bf16[128,128], index: 3, kind: input, shape index: {}]   ;;  %s1975_s4 = inlined_call_operand.vmem [shape: f32[1,128], index: 4, kind: input, shape index: {}]   ;;  %s1976_s5 = inlined_call_operand.vmem [shape: f32[16,128], index: 5, kind: output, shape index: {}]  }
   0x1   :  { %12 = vsyncpa [#allocation5 + $0x1], 0  ;;  %s1741_s18 = smov 0   ;;  %s1743_s19 = smov 0  }
   0x2   :  { %s1745_s20 = smov 0   ;;  %s1747_s21 = smov 0  }
   0x3   :  { %s1749_s22 = smov 0   ;;  %s1751_s23 = smov 0  }
   0x4 LB: > { %s1281_s24 = sadd.s32 4294967295, %s1704_s23   ;;  %s27_s25 = sadd.s32 1, %s1700_s22  ;;  %s1704_s23 = sphi %s1751_s23, %s18_s23   ;;  %s1700_s22 = sphi %s1749_s22, %s1983_s22   ;;  %s1696_s21 = sphi %s1747_s21, %s1982_s21   ;;  %s1692_s20 = sphi %s1745_s20, %s1981_s20   ;;  %s1688_s19 = sphi %s1743_s19, %s1980_s19   ;;  %s1684_s18 = sphi %s1741_s18, %s1979_s18  }
   0x5   : > { %p28_p0 = scmp.ge.s32.totalorder %s27_s25, 3  ;;  %s39_s26 = sadd.s32 1, %s1692_s20 }
   0x6   : > { %p46_p1 = scmp.ne.s32.totalorder %s1692_s20, %s1688_s19  ;;  %p47_p2 = scmp.eq.s32.totalorder %s1704_s23, 0 }
   0x7   : > { %s1985_s25 = smov (%p28_p0, %s27_s25), 0  ;;  %p78_p4 = scmp.ne.s32.totalorder %s1688_s19, %s1684_s18 }
   0x8   : > { %p1777_p3 = por %p47_p2, %p46_p1  ;;  %s35_s28 = ssub.s32 %s1700_s22, %s1985_s25 }
   0x9   : > { %p79_p5 = scmp.eq.s32.totalorder %s1281_s24, 0  ;;  %p37_p6 = scmp.eq.s32.totalorder %s35_s28, 0 }
   0xa   : > { %p1283_p8 = scmp.ge.s32.totalorder %s1704_s23, 3 }
   0xb   : > { %p1784_p7 = por %p79_p5, %p78_p4 }
   0xc   : > { %s1789_s30 = scalar_select %p37_p6, %s1692_s20, %s39_s26  }
   0xd   : > { %196 = sbr.rel (%p1283_p8) target bundleno = 54 (0x36), region = 28 }
  0x14   : > { %199 = sbr.rel (!%p1777_p3) target bundleno = 28 (0x1c), region = 32  ;;  %s201_s6 = sand.u32 (%p1777_p3), 1, %s1692_s20  }
  0x15   : > { %s1381_s7 = sshll.u32 (%p1777_p3), %s1700_s22, 5  ;;  %s1284_s8 = sshll.u32 (%p1777_p3), %s201_s6, 6 }
  0x16   : > { %s209_s11 = scalar_lea.vmem (%p1777_p3), %s1971_s0, %s1381_s7  ;;  %s203_s12 = scalar_lea.vmem (%p1777_p3), [#allocation3], %s1284_s8 }
  0x17   : > { %v222_v0 = vld [vmem:[%s209_s11] sm:$0xff] (%p1777_p3)  ;;  %v224_v1 = vld [vmem:[%s209_s11 + $0x8] sm:$0xff] (%p1777_p3)  ;;  %v226_v2 = vld [vmem:[%s209_s11 + $0x10] sm:$0xff] (%p1777_p3) }
  0x18   : > { %223 = vst [vmem:[%s203_s12] sm:$0xff] (%p1777_p3), %v222_v0  ;;  %225 = vst [vmem:[%s203_s12 + $0x8] sm:$0xff] (%p1777_p3), %v224_v1  ;;  %v228_v3 = vld [vmem:[%s209_s11 + $0x18] sm:$0xff] (%p1777_p3)  ;;  %v230_v4 = vld [vmem:[%s209_s11 + $0x60] sm:$0xff] (%p1777_p3) }
  0x19   : > { %227 = vst [vmem:[%s203_s12 + $0x10] sm:$0xff] (%p1777_p3), %v226_v2  ;;  %v232_v5 = vld [vmem:[%s209_s11 + $0x68] sm:$0xff] (%p1777_p3)  ;;  %229 = vst [vmem:[%s203_s12 + $0x18] sm:$0xff] (%p1777_p3), %v228_v3  ;;  %v234_v6 = vld [vmem:[%s209_s11 + $0x70] sm:$0xff] (%p1777_p3) }
  0x1a   : > { %231 = vst [vmem:[%s203_s12 + $0x20] sm:$0xff] (%p1777_p3), %v230_v4  ;;  %233 = vst [vmem:[%s203_s12 + $0x28] sm:$0xff] (%p1777_p3), %v232_v5  ;;  %v236_v7 = vld [vmem:[%s209_s11 + $0x78] sm:$0xff] (%p1777_p3) }
  0x1b   : > { %235 = vst [vmem:[%s203_s12 + $0x30] sm:$0xff] %v234_v6  ;;  %237 = vst [vmem:[%s203_s12 + $0x38] sm:$0xff] %v236_v7 }
  0x1c PF: > { %s244_s13 = sand.u32 1, %s1692_s20   ;;  %s1382_s14 = sshll.u32 %s1700_s22, 13 }
  0x1d   : > { %s1287_s15 = sshll.u32 %s244_s13, 9  ;;  %s1804_s18 = scalar_lea.hbm %s1972_s1, %s1382_s14 }
  0x1e   : > { %s248_s24 = scalar_lea.vmem [#allocation4], %s1287_s15  ;;  %s1808_s28 = scalar_lea.sflag [#allocation5], %s244_s13 }
  0x1f   : > { %s255_s26 = sshll.u32 %s248_s24, 4  ;;  %s1626_s6 = scalar_lea.hbm %s1804_s18, 8192  ;;  %s1806_s26 = int_to_ptr.vmem [resolvable:$true] %s255_s26 }
  0x20   : > { %p1627_p9 = scmp.ne.s32.totalorder %s1804_s18, %s1626_s6  ;;  %s1630_s9 = scalar_lea.hbm %s1972_s1, 24576 }
  0x21   : > { %p1631_p12 = scmp.lt.u32.totalorder %s1804_s18, %s1972_s1  ;;  %p1632_p13 = scmp.lt.u32.totalorder %s1630_s9, %s1626_s6 }
  0x22   : > { %p1628_p10 = pnand %p1627_p9, %p1777_p3  ;;  %p1634_p1 = scmp.lt.u32.totalorder %s1626_s6, %s1804_s18 }
  0x23   : > { %p1633_p0 = por %p1632_p13, %p1631_p12 }
  0x24   : > { %p1629_p11 = pneg %p1628_p10 }
  0x25   : > { %p1635_p2 = por %p1634_p1, %p1633_p0 }
  0x27   : > { %p1636_p4 = pnand %p1635_p2, %p1629_p11 }
  0x29   : > { %1639 = shalt.err (!%p1636_p4)
}
  0x2a   : > { %s1640_s12 = scalar_lea.vmem %s1806_s26, 8192  ;;  %s1706_s13 = smov [#allocation4]  }
  0x2b   : > { %p1641_p5 = scmp.ne.s32.totalorder %s1806_s26, %s1640_s12  ;;  %s1644_s14 = sshll.u32 %s1706_s13, 4  ;;  %s1645_s14 = int_to_ptr.vmem [resolvable:$false] %s1644_s14 }
  0x2c   : > { %s1646_s15 = scalar_lea.vmem %s1645_s14, 16384  ;;  %p1647_p9 = scmp.lt.s32.totalorder %s1806_s26, %s1645_s14 }
  0x2d   : > { %p1642_p6 = pnand %p1641_p5, %p1777_p3  ;;  %p1648_p10 = scmp.lt.s32.totalorder %s1646_s15, %s1640_s12 }
  0x2f   : > { %p1643_p8 = pneg %p1642_p6  ;;  %p1649_p12 = por %p1648_p10, %p1647_p9 }
  0x31   : > { %p1650_p13 = pnand %p1649_p12, %p1643_p8 }
  0x33   : > { %1653 = shalt.err (!%p1650_p13)
}
  0x34   : > { %s1707_s16 = smov 64   ;;  %s1708_s17 = smov 4  }
  0x35   : > { %1500 = dma.hbm_to_vmem [thread:$0]  (%p1777_p3), %s1804_s18, 8192, %s1806_s26, %s1808_s28, %s1707_s16, %s1707_s16, %s1708_s17  }
  0x36 PF: > { %p1290_p11 = scmp.ge.s32.totalorder %s1704_s23, 1  ;;  %p263_p0 = scmp.lt.s32.totalorder %s1704_s23, 4 }
  0x38   : > { %p264_p1 = pnand %p1290_p11, %p263_p0 }
  0x39   : > { %s270_s24 = sand.u32 (!%p264_p1), 1, %s1688_s19  }
  0x3a   : > { %267 = sbr.rel (%p264_p1) target bundleno = 593 (0x251), region = 59  ;;  %s1291_s6 = sshll.u32 (!%p264_p1), %s270_s24, 6 }
  0x3b   : > { %s1292_s7 = sshll.u32 (!%p264_p1), %s270_s24, 9  ;;  %s1835_s8 = scalar_lea.vmem (!%p264_p1), [#allocation3], %s1291_s6 }
  0x3c   : > { %s277_s9 = scalar_lea.sflag (!%p264_p1), [#allocation5], %s270_s24  ;;  %s1837_s10 = scalar_lea.vmem (!%p264_p1), [#allocation4], %s1292_s7 }
  0x41   : > { %1679 = dma.done.wait (%p1784_p7), %s277_s9, 8192  }
  0x42   : > { %1681 = vsyncadd (%p1784_p7), %s277_s9, 4294959104  ;;  %p1293_p3 = scmp.ne.s32.totalorder %s1696_s21, 0 }
  0x43   : > { %v1294_v8 = vld [vmem:[%s1973_s2] ss:$0 sm:$0xff] (!%p1293_p3) }
  0x44   : > { %324 = sbr.rel (%p1293_p3) target bundleno = 75 (0x4b), region = 71  ;;  %332 = vst [vmem:[#allocation2] sm:$0xff] (!%p1293_p3), %v1294_v8  ;;  %333 = vst [vmem:[#allocation2 + $0x8] sm:$0xff] (!%p1293_p3), %v1294_v8 }
  0x4b PF: > { %v1554_v9 = vld [vmem:[%s1837_s10 + $0x40] sm:$0xff]   ;;  %v1558_v13 = vld [vmem:[%s1837_s10 + $0x48] sm:$0xff]   ;;  %v1562_v17 = vld [vmem:[%s1837_s10 + $0x50] sm:$0xff]   ;;  %p1367_p7 = scmp.ne.s32.totalorder %s1696_s21, 2 }
  0x4c   : > { %v1555_v10 = vld [vmem:[%s1837_s10 + $0xc0] sm:$0xff]   ;;  %1383 = vmatprep.subr.bf16.mxu0 %v1554_v9  ;;  %v1559_v14 = vld [vmem:[%s1837_s10 + $0xc8] sm:$0xff]   ;;  %v1563_v18 = vld [vmem:[%s1837_s10 + $0xd0] sm:$0xff]   ;;  %vm1710_vm0 = vmmov (!%p1367_p7), 0  }
  0x4d   : > { %v1556_v11 = vld [vmem:[%s1837_s10] sm:$0xff]   ;;  %1405 = vmatprep.subr.bf16.mxu1 %v1555_v10  ;;  %v1560_v15 = vld [vmem:[%s1837_s10 + $0x8] sm:$0xff]   ;;  %v1564_v19 = vld [vmem:[%s1837_s10 + $0x10] sm:$0xff]  }
  0x4e   : > { %v1557_v12 = vld [vmem:[%s1837_s10 + $0x80] sm:$0xff]   ;;  %1384 = vmatpush3.bf16.msra.mxu0 %v1556_v11  ;;  %v1561_v16 = vld [vmem:[%s1837_s10 + $0x88] sm:$0xff]   ;;  %v1565_v20 = vld [vmem:[%s1837_s10 + $0x90] sm:$0xff]  }
  0x4f   : > { %1406 = vmatpush3.bf16.msra.mxu1 %v1557_v12  ;;  %1385 = vmatprep.subr.bf16.mxu0 %v1558_v13  ;;  %v1566_v21 = vld [vmem:[%s1837_s10 + $0x58] sm:$0xff]   ;;  %v1570_v25 = vld [vmem:[%s1837_s10 + $0x60] sm:$0xff]   ;;  %v1574_v29 = vld [vmem:[%s1837_s10 + $0x68] sm:$0xff]  }
  0x50   : > { %1407 = vmatprep.subr.bf16.mxu1 %v1559_v14  ;;  %v1567_v22 = vld [vmem:[%s1837_s10 + $0xd8] sm:$0xff]   ;;  %v1571_v26 = vld [vmem:[%s1837_s10 + $0xe0] sm:$0xff]   ;;  %v1575_v30 = vld [vmem:[%s1837_s10 + $0xe8] sm:$0xff]  }
  0x51   : > { %v1568_v23 = vld [vmem:[%s1837_s10 + $0x18] sm:$0xff]   ;;  %v1572_v27 = vld [vmem:[%s1837_s10 + $0x20] sm:$0xff]   ;;  %v1576_v31 = vld [vmem:[%s1837_s10 + $0x28] sm:$0xff]  }
  0x52   : > { %1386 = vmatpush3.bf16.msra.mxu0 %v1560_v15  ;;  %v1569_v24 = vld [vmem:[%s1837_s10 + $0x98] sm:$0xff]   ;;  %v1573_v28 = vld [vmem:[%s1837_s10 + $0xa0] sm:$0xff]   ;;  %v1577_v32 = vld [vmem:[%s1837_s10 + $0xa8] sm:$0xff]  }
  0x53   : > { %1408 = vmatpush3.bf16.msra.mxu1 %v1561_v16  ;;  %1387 = vmatprep.subr.bf16.mxu0 %v1562_v17  ;;  %v1578_v33 = vld [vmem:[%s1837_s10 + $0x70] sm:$0xff]   ;;  %v1582_v37 = vld [vmem:[%s1837_s10 + $0x78] sm:$0xff]   ;;  %v336_v41 = vld [vmem:[%s1835_s8] sm:$0xff] }
  0x54   : > { %1409 = vmatprep.subr.bf16.mxu1 %v1563_v18  ;;  %v1579_v34 = vld [vmem:[%s1837_s10 + $0xf0] sm:$0xff]   ;;  %v1583_v38 = vld [vmem:[%s1837_s10 + $0xf8] sm:$0xff]   ;;  %v340_v42 = vld [vmem:[%s1835_s8 + $0x20] sm:$0xff] }
  0x55   : > { %v1580_v35 = vld [vmem:[%s1837_s10 + $0x30] sm:$0xff]   ;;  %v1584_v39 = vld [vmem:[%s1837_s10 + $0x38] sm:$0xff]   ;;  %v337_v43 = vld [vmem:[%s1835_s8 + $0x8] sm:$0xff]  ;;  %v1295_v44 = vcombine.low %v336_v41, %v340_v42  ;;  %v1296_v45 = vcombine.high %v336_v41, %v340_v42 }
  0x56   : > { %1388 = vmatpush3.bf16.msra.mxu0 %v1564_v19  ;;  %v1581_v36 = vld [vmem:[%s1837_s10 + $0xb0] sm:$0xff]   ;;  %v1585_v40 = vld [vmem:[%s1837_s10 + $0xb8] sm:$0xff]   ;;  %v341_v46 = vld [vmem:[%s1835_s8 + $0x28] sm:$0xff] }
  0x57   : > { %1410 = vmatpush3.bf16.msra.mxu1 %v1565_v20  ;;  %1389 = vmatprep.subr.bf16.mxu0 %v1566_v21  ;;  %v1297_v47 = vcombine.low %v337_v43, %v341_v46  ;;  %v1298_v48 = vcombine.high %v337_v43, %v341_v46  ;;  %v1586_v49 = vld [vmem:[%s1837_s10 + $0x140] sm:$0xff]   ;;  %v1590_v53 = vld [vmem:[%s1837_s10 + $0x148] sm:$0xff]   ;;  %v1594_v57 = vld [vmem:[%s1837_s10 + $0x150] sm:$0xff]  }
  0x58   : > { %1411 = vmatprep.subr.bf16.mxu1 %v1567_v22  ;;  %928 = vmatprep.mubr.bf16.mxu0 %v1296_v45  ;;  %v1587_v50 = vld [vmem:[%s1837_s10 + $0x1c0] sm:$0xff]   ;;  %v1591_v54 = vld [vmem:[%s1837_s10 + $0x1c8] sm:$0xff]   ;;  %v1595_v58 = vld [vmem:[%s1837_s10 + $0x1d0] sm:$0xff]  }
  0x59   : > { %969 = vmatprep.mubr.bf16.mxu1 %v1298_v48  ;;  %v1588_v51 = vld [vmem:[%s1837_s10 + $0x100] sm:$0xff]   ;;  %v1592_v55 = vld [vmem:[%s1837_s10 + $0x108] sm:$0xff]   ;;  %v1596_v59 = vld [vmem:[%s1837_s10 + $0x110] sm:$0xff]  }
  0x5a   : > { %1390 = vmatpush3.bf16.msra.mxu0 %v1568_v23  ;;  %v1589_v52 = vld [vmem:[%s1837_s10 + $0x180] sm:$0xff]   ;;  %v1593_v56 = vld [vmem:[%s1837_s10 + $0x188] sm:$0xff]   ;;  %v1597_v60 = vld [vmem:[%s1837_s10 + $0x190] sm:$0xff]  }
  0x5b   : > { %1412 = vmatpush3.bf16.msra.mxu1 %v1569_v24  ;;  %1391 = vmatprep.subr.bf16.mxu0 %v1570_v25  ;;  %v1598_v61 = vld [vmem:[%s1837_s10 + $0x158] sm:$0xff]   ;;  %v1602_v1 = vld [vmem:[%s1837_s10 + $0x160] sm:$0xff]   ;;  %v1606_v5 = vld [vmem:[%s1837_s10 + $0x168] sm:$0xff]  }
  0x5c   : > { %1413 = vmatprep.subr.bf16.mxu1 %v1571_v26  ;;  %v1599_v62 = vld [vmem:[%s1837_s10 + $0x1d8] sm:$0xff]   ;;  %v1603_v2 = vld [vmem:[%s1837_s10 + $0x1e0] sm:$0xff]   ;;  %v1607_v6 = vld [vmem:[%s1837_s10 + $0x1e8] sm:$0xff]  }
  0x5d   : > { %v1600_v63 = vld [vmem:[%s1837_s10 + $0x118] sm:$0xff]   ;;  %v1604_v3 = vld [vmem:[%s1837_s10 + $0x120] sm:$0xff]   ;;  %v1608_v7 = vld [vmem:[%s1837_s10 + $0x128] sm:$0xff]  }
  0x5e   : > { %1392 = vmatpush3.bf16.msra.mxu0 %v1572_v27  ;;  %v1601_v0 = vld [vmem:[%s1837_s10 + $0x198] sm:$0xff]   ;;  %v1605_v4 = vld [vmem:[%s1837_s10 + $0x1a0] sm:$0xff]   ;;  %v1609_v8 = vld [vmem:[%s1837_s10 + $0x1a8] sm:$0xff]  }
  0x5f   : > { %1414 = vmatpush3.bf16.msra.mxu1 %v1573_v28  ;;  %1393 = vmatprep.subr.bf16.mxu0 %v1574_v29  ;;  %v1610_v9 = vld [vmem:[%s1837_s10 + $0x170] sm:$0xff]   ;;  %v1614_v13 = vld [vmem:[%s1837_s10 + $0x178] sm:$0xff]  }
  0x60   : > { %1415 = vmatprep.subr.bf16.mxu1 %v1575_v30  ;;  %v1611_v10 = vld [vmem:[%s1837_s10 + $0x1f0] sm:$0xff]   ;;  %v1615_v14 = vld [vmem:[%s1837_s10 + $0x1f8] sm:$0xff]  }
  0x61   : > { %v1612_v11 = vld [vmem:[%s1837_s10 + $0x130] sm:$0xff]   ;;  %v1616_v15 = vld [vmem:[%s1837_s10 + $0x138] sm:$0xff]  }
  0x62   : > { %1394 = vmatpush3.bf16.msra.mxu0 %v1576_v31  ;;  %v1613_v12 = vld [vmem:[%s1837_s10 + $0x1b0] sm:$0xff]   ;;  %v1617_v16 = vld [vmem:[%s1837_s10 + $0x1b8] sm:$0xff]  }
  0x63   : > { %1416 = vmatpush3.bf16.msra.mxu1 %v1577_v32  ;;  %1395 = vmatprep.subr.bf16.mxu0 %v1578_v33  ;;  %v338_v17 = vld [vmem:[%s1835_s8 + $0x10] sm:$0xff]  ;;  %v339_v21 = vld [vmem:[%s1835_s8 + $0x18] sm:$0xff] }
  0x64   : > { %1417 = vmatprep.subr.bf16.mxu1 %v1579_v34  ;;  %v342_v18 = vld [vmem:[%s1835_s8 + $0x30] sm:$0xff]  ;;  %v343_v22 = vld [vmem:[%s1835_s8 + $0x38] sm:$0xff] }
  0x65   : > { %v1299_v19 = vcombine.low %v338_v17, %v342_v18  ;;  %v1300_v20 = vcombine.high %v338_v17, %v342_v18  ;;  %v1301_v23 = vcombine.low %v339_v21, %v343_v22  ;;  %v1302_v24 = vcombine.high %v339_v21, %v343_v22 }
  0x66   : > { %1396 = vmatpush3.bf16.msra.mxu0 %v1580_v35 }
  0x67   : > { %1418 = vmatpush3.bf16.msra.mxu1 %v1581_v36  ;;  %1397 = vmatprep.subr.bf16.mxu0 %v1582_v37 }
  0x68   : > { %1419 = vmatprep.subr.bf16.mxu1 %v1583_v38 }
  0x6a   : > { %1398 = vmatpush3.bf16.msra.mxu0 %v1584_v39 }
  0x6b   : > { %1420 = vmatpush3.bf16.msra.mxu1 %v1585_v40  ;;  %1427 = vmatprep.subr.bf16.mxu0 %v1586_v49 }
  0x6c   : > { %1449 = vmatprep.subr.bf16.mxu1 %v1587_v50 }
  0x6d   : > { %929 = vmatmul.mubr.bf16.vlgmr.msra.gmra.mrb[0].mxu0 %v1295_v44 }
  0x6e   : > { %970 = vmatmul.mubr.bf16.vlgmr.msra.gmra.mrb[0].mxu1 %v1297_v47  ;;  %1428 = vmatpush3.bf16.msra.mxu0 %v1588_v51  ;;  %v334_v51 = vld [vmem:[#allocation2] sm:$0xff] }
  0x6f   : > { %1450 = vmatpush3.bf16.msra.mxu1 %v1589_v52  ;;  %1429 = vmatprep.subr.bf16.mxu0 %v1590_v53 }
  0x70   : > { %1451 = vmatprep.subr.bf16.mxu1 %v1591_v54  ;;  %1010 = vmatprep.mubr.bf16.mxu0 %v1300_v20 }
  0x71   : > { %1051 = vmatprep.mubr.bf16.mxu1 %v1302_v24 }
  0x72   : > { %1430 = vmatpush3.bf16.msra.mxu0 %v1592_v55  ;;  %v335_v55 = vld [vmem:[#allocation2 + $0x8] sm:$0xff] }
  0x73   : > { %1452 = vmatpush3.bf16.msra.mxu1 %v1593_v56  ;;  %1431 = vmatprep.subr.bf16.mxu0 %v1594_v57 }
  0x74   : > { %1453 = vmatprep.subr.bf16.mxu1 %v1595_v58 }
  0x76   : > { %1432 = vmatpush3.bf16.msra.mxu0 %v1596_v59  ;;  %v1618_v59 = vld [vmem:[%s1974_s3] sm:$0xff] (!%p1367_p7)  }
  0x77   : > { %1454 = vmatpush3.bf16.msra.mxu1 %v1597_v60  ;;  %1433 = vmatprep.subr.bf16.mxu0 %v1598_v61  ;;  %v1709_v60 = vmov (!%p1367_p7), 0.0   ;;  %v1619_v61 = vld [vmem:[%s1974_s3 + $0x8] sm:$0xff] (!%p1367_p7)  }
  0x78   : > { %1455 = vmatprep.subr.bf16.mxu1 %v1599_v62  ;;  %v1620_v62 = vld [vmem:[%s1974_s3 + $0x10] sm:$0xff] (!%p1367_p7)  }
  0x7a   : > { %1434 = vmatpush3.bf16.msra.mxu0 %v1600_v63  ;;  %v1621_v63 = vld [vmem:[%s1974_s3 + $0x18] sm:$0xff] (!%p1367_p7)  }
  0x7b   : > { %1456 = vmatpush3.bf16.msra.mxu1 %v1601_v0  ;;  %1435 = vmatprep.subr.bf16.mxu0 %v1602_v1  ;;  %v1622_v0 = vld [vmem:[%s1974_s3 + $0x20] sm:$0xff] (!%p1367_p7)   ;;  %v1623_v1 = vld [vmem:[%s1974_s3 + $0x28] sm:$0xff] (!%p1367_p7)  }
  0x7c   : > { %1457 = vmatprep.subr.bf16.mxu1 %v1603_v2  ;;  %v1624_v2 = vld [vmem:[%s1974_s3 + $0x30] sm:$0xff] (!%p1367_p7)  }
  0x7e   : > { %1436 = vmatpush3.bf16.msra.mxu0 %v1604_v3 }
  0x7f   : > { %1458 = vmatpush3.bf16.msra.mxu1 %v1605_v4  ;;  %1437 = vmatprep.subr.bf16.mxu0 %v1606_v5 }
  0x80   : > { %1459 = vmatprep.subr.bf16.mxu1 %v1607_v6 }
  0x82   : > { %1438 = vmatpush3.bf16.msra.mxu0 %v1608_v7  ;;  %v1625_v7 = vld [vmem:[%s1974_s3 + $0x38] sm:$0xff] (!%p1367_p7)  }
  0x83   : > { %1460 = vmatpush3.bf16.msra.mxu1 %v1609_v8  ;;  %1439 = vmatprep.subr.bf16.mxu0 %v1610_v9  ;;  %v1368_v9 = vld [vmem:[%s1975_s4] ss:$0 sm:$0xff] (!%p1367_p7) }
  0x84   : > { %1461 = vmatprep.subr.bf16.mxu1 %v1611_v10 }
  0x86   : > { %1440 = vmatpush3.bf16.msra.mxu0 %v1612_v11 }
  0x87   : > { %1462 = vmatpush3.bf16.msra.mxu1 %v1613_v12  ;;  %1441 = vmatprep.subr.bf16.mxu0 %v1614_v13 }
  0x88   : > { %1463 = vmatprep.subr.bf16.mxu1 %v1615_v14 }
  0x8a   : > { %1442 = vmatpush3.bf16.msra.mxu0 %v1616_v15 }
  0x8b   : > { %1464 = vmatpush3.bf16.msra.mxu1 %v1617_v16  ;;  %1480 = vmatprep.subr.bf16.mxu0 (!%p1367_p7), %v1709_v60 }
  0x8d   : > { %1011 = vmatmul.mubr.bf16.vlgmr.msra.gmra.mrb[4].mxu0 %v1299_v19 }
  0x8e   : > { %1052 = vmatmul.mubr.bf16.vlgmr.msra.gmra.mrb[4].mxu1 %v1301_v23  ;;  %1481 = vmatpush3.bf16.msra.mxu0 (!%p1367_p7), %v1618_v59 }
  0x8f   : > { %1496 = vmatprep.mubr.msk.bf16.mxu0 (!%p1367_p7), %vm1710_vm0, %v1709_v60  ;;  %1482 = vmatprep.subr.bf16.mxu0 (!%p1367_p7), %v1709_v60 }
  0x92   : > { %1483 = vmatpush3.bf16.msra.mxu0 (!%p1367_p7), %v1619_v61 }
  0x93   : > { %1484 = vmatprep.subr.bf16.mxu0 (!%p1367_p7), %v1709_v60 }
  0x96   : > { %1485 = vmatpush3.bf16.msra.mxu0 (!%p1367_p7), %v1620_v62 }
  0x97   : > { %1486 = vmatprep.subr.bf16.mxu0 (!%p1367_p7), %v1709_v60 }
  0x9a   : > { %1487 = vmatpush3.bf16.msra.mxu0 (!%p1367_p7), %v1621_v63 }
  0x9b   : > { %1488 = vmatprep.subr.bf16.mxu0 (!%p1367_p7), %v1709_v60 }
  0x9e   : > { %1489 = vmatpush3.bf16.msra.mxu0 (!%p1367_p7), %v1622_v0 }
  0x9f   : > { %1490 = vmatprep.subr.bf16.mxu0 (!%p1367_p7), %v1709_v60 }
  0xa2   : > { %1491 = vmatpush3.bf16.msra.mxu0 (!%p1367_p7), %v1623_v1 }
  0xa3   : > { %1492 = vmatprep.subr.bf16.mxu0 (!%p1367_p7), %v1709_v60 }
  0xa6   : > { %1493 = vmatpush3.bf16.msra.mxu0 (!%p1367_p7), %v1624_v2 }
  0xa7   : > { %1494 = vmatprep.subr.bf16.mxu0 (!%p1367_p7), %v1709_v60 }
  0xaa   : > { %1495 = vmatpush3.bf16.msra.mxu0 (!%p1367_p7), %v1625_v7 }
 0x140   : > { %v1399_v25 = vpop.f32.mrb[0].mxu0 }
 0x141   : > { %v1421_v26 = vpop.f32.mrb[0].mxu1  ;;  %v1400_v27 = vpop.f32.mrb[1].mxu0 }
 0x142   : > { %v1401_v28 = vadd.f32 %v1400_v27, %v1399_v25  ;;  %v1422_v29 = vpop.f32.mrb[1].mxu1  ;;  %v1402_v30 = vpop.f32.mrb[2].mxu0 }
 0x143   : > { %v1423_v31 = vadd.f32 %v1422_v29, %v1421_v26  ;;  %v1424_v32 = vpop.f32.mrb[2].mxu1  ;;  %v1403_v33 = vpop.f32.mrb[3].mxu0 }
 0x144   : > { %v1404_v34 = vadd.f32 %v1403_v33, %v1402_v30  ;;  %v1425_v35 = vpop.f32.mrb[3].mxu1 }
 0x145   : > { %v972_v36 = vadd.f32 %v1423_v31, %v1401_v28  ;;  %v1426_v37 = vadd.f32 %v1425_v35, %v1424_v32 }
 0x147   : > { %v975_v38 = vadd.f32 %v1426_v37, %v1404_v34 }
 0x160   : > { %v1443_v39 = vpop.f32.mrb[4].mxu0 }
 0x161   : > { %v1465_v40 = vpop.f32.mrb[4].mxu1  ;;  %v1444_v41 = vpop.f32.mrb[5].mxu0 }
 0x162   : > { %v1445_v42 = vadd.f32 %v1444_v41, %v1443_v39  ;;  %v1466_v43 = vpop.f32.mrb[5].mxu1  ;;  %v1446_v44 = vpop.f32.mrb[6].mxu0 }
 0x163   : > { %v1467_v45 = vadd.f32 %v1466_v43, %v1465_v40  ;;  %v1468_v46 = vpop.f32.mrb[6].mxu1  ;;  %v1447_v47 = vpop.f32.mrb[7].mxu0 }
 0x164   : > { %v1013_v48 = vadd.f32 %v1445_v42, %v972_v36  ;;  %v1448_v49 = vadd.f32 %v1447_v47, %v1446_v44  ;;  %v1469_v50 = vpop.f32.mrb[7].mxu1 }
 0x165   : > { %v1470_v52 = vadd.f32 %v1469_v50, %v1468_v46 }
 0x166   : > { %v1054_v53 = vadd.f32 %v1467_v45, %v1013_v48  ;;  %v1016_v54 = vadd.f32 %v1448_v49, %v975_v38  ;;  %1067 = sbr.rel (%p1367_p7) target bundleno = 593 (0x251), region = 75 }
 0x168   : > { %v1060_v56 = vadd.f32 %v1054_v53, %v334_v51  ;;  %v1057_v57 = vadd.f32 %v1470_v52, %v1016_v54 }
 0x16a   : > { %1062 = vst [vmem:[#allocation2] sm:$0xff] %v1060_v56  ;;  %v1061_v58 = vadd.f32 %v1057_v57, %v335_v55 }
 0x16c   : > { %1063 = vst [vmem:[#allocation2 + $0x8] sm:$0xff] %v1061_v58 }
 0x171   : > { %v1068_v3 = vld [vmem:[#allocation2] sm:$0xff] }
 0x172   : > { %v1070_v5 = vmax.f32 %v1068_v3, 0.0 }
 0x173   : > { %v1069_v4 = vld [vmem:[#allocation2 + $0x8] sm:$0xff] }
 0x174   : > { %v1071_v6 = vmax.f32 %v1069_v4, 0.0 }
 0x176   : > { %v1072_v8 = vpack.c.bf16 %v1071_v6, %v1070_v5 }
 0x178   : > { %1497 = vmatmul.mubr.bf16.vlgmr.msra.gmra.mrb[0].mxu0 %v1072_v8 }
 0x24b   : > { %v1178_v10 = vpop.f32.mrb[0].mxu0 }
 0x24c   : > { %v1179_v11 = vadd.f32 %v1368_v9, %v1178_v10  ;;  %v1498_v12 = vpop.f32.mrb[1].mxu0 }
 0x24d   : > { %v1181_v13 = vpop.f32.mrb[2].mxu0 }
 0x24e   : > { %1185 = vst [vmem:[%s1976_s5] sm:$0xff] %v1179_v11  ;;  %v1182_v14 = vadd.f32 %v1368_v9, %v1181_v13  ;;  %v1499_v15 = vpop.f32.mrb[3].mxu0 }
 0x250   : > { %1186 = vst [vmem:[%s1976_s5 + $0x8] sm:$0xff] %v1182_v14 }
 0x251 PF: > { %s18_s23 = sadd.s32 1, %s1704_s23   ;;  %s1979_s18 = smov %s1688_s19 }
 0x252   : > { %p15_p2 = scmp.ge.s32.totalorder %s18_s23, 5   ;;  %s1980_s19 = smov %s1692_s20 }
 0x253   : > { %s1981_s20 = smov %s1789_s30  ;;  %s1982_s21 = smov %s1700_s22 }
 0x254   : > { %s1983_s22 = smov %s1985_s25  ;;  %17 = sbr.rel (!%p15_p2) target bundleno = 4 (0x4), region = 119 }
 0x25b   :  { %1209 = vsyncpa [#allocation5], 1 }
 0x25c   :  { %1211 = vsyncpa [#allocation5 + $0x1], 1 }

</bundles_post_ra>
